<compile_context>
chip_gen: v6e
topology: v6e:2x2x1
jax: 0.10.0
libtpu: 0.0.40
codegen_flags: <defaults>
</compile_context>

<pallas_src>
import warnings

import numpy as np

import jax
import jax.numpy as jnp
from jax.experimental import pallas as pl
from jax.experimental.pallas import tpu as pltpu


def _identity_copy_kernel(x_ref, o_ref):
    # Pure pass-through of the current tile.
    o_ref[...] = x_ref[...]


def _tpu_generation_caps():
    """Return (target block bytes, scoped-VMEM limit bytes) per generation."""
    try:
        vmem_cap = pltpu.get_tpu_info().vmem_capacity_bytes
    except Exception:
        vmem_cap = None

    if vmem_cap is not None and vmem_cap > (64 << 20):
        # v5e / v6e: 128 MiB physical VMEM.  16 MiB blocks (4x double-buffered
        # footprint = 64 MiB) cut the ~0.35 us per-step overhead to ~1-3%.
        # The explicit scoped-VMEM raise is mandatory on v5e (default 16 MiB).
        return 16 << 20, 80 << 20

    # v7x (64 MiB physical VMEM per TC) or unknown: stay conservative.
    # 8 MiB blocks -> 32 MiB double-buffered footprint; never request the full
    # 64 MiB of scoped VMEM (leave headroom for compiler scratch/semaphores).
    return 8 << 20, 48 << 20


def _choose_layout(total, itemsize, target_bytes):
    """Pick a lane-dense (rows, lanes) flatten, block rows, and tail padding."""
    # Sublane packing granularity per dtype width (f32: 8, bf16: 16, int8: 32).
    pack = {4: 8, 2: 16, 1: 32}.get(itemsize, 8)

    # Lane-dense last dim: largest of these multiples of 128 dividing total.
    lanes = None
    for cand in (8192, 4096, 2048, 1024, 512, 256, 128):
        if total % cand == 0:
            lanes = cand
            break

    pad = 0
    if lanes is None:
        # Awkward totals: pad the flattened array to the next multiple of 128
        # so every store stays an unmasked, lane-dense vst (never vst.msk on a
        # 16-wide tail).  The pad is sliced off again in the wrapper.
        lanes = 128
        pad = (-total) % 128

    rows = (total + pad) // lanes

    # Target `target_bytes` per block (amortizes per-grid-step overhead while
    # keeping the 2-in + 2-out double-buffered footprint well inside VMEM).
    block_rows = max(1, target_bytes // (lanes * itemsize))
    if block_rows >= rows:
        if rows >= 2 * pack:
            # Keep >= 2 blocks when rows permit so dimension_semantics
            # ("parallel",) can shard the copy across v7x's two TensorCores.
            block_rows = max(pack, ((rows // 2) // pack) * pack)
        else:
            # Whole array as a single block ((8,128) full-extent escape hatch).
            block_rows = rows
    else:
        block_rows = max(pack, (block_rows // pack) * pack)

    return rows, lanes, block_rows, pad


def _identity_pallas(x):
    """Streaming identity copy through a Pallas kernel (debug path)."""
    orig_shape = x.shape
    dtype = x.dtype
    itemsize = jnp.dtype(dtype).itemsize
    total = int(np.prod(orig_shape)) if len(orig_shape) else 1

    target_bytes, vmem_limit = _tpu_generation_caps()
    rows, lanes, block_rows, pad = _choose_layout(total, itemsize, target_bytes)

    # Layout plumbing only: contiguous reshape (+ optional lane padding).
    flat = x.reshape(-1)
    if pad:
        flat = jnp.pad(flat, (0, pad))
    x2d = flat.reshape(rows, lanes)

    grid = (pl.cdiv(rows, block_rows),)

    out2d = pl.pallas_call(
        _identity_copy_kernel,
        out_shape=jax.ShapeDtypeStruct((rows, lanes), dtype),
        grid_spec=pltpu.PrefetchScalarGridSpec(
            num_scalar_prefetch=0,
            grid=grid,
            in_specs=[pl.BlockSpec((block_rows, lanes), lambda i: (i, 0))],
            out_specs=pl.BlockSpec((block_rows, lanes), lambda i: (i, 0)),
        ),
        # Output aliases the input buffer.  NOTE: this is only truly in-place
        # when the caller donates x at the jit boundary (donate_argnums=0, see
        # __main__); otherwise XLA inserts a defensive copy of x first.
        input_output_aliases={0: 0},
        compiler_params=pltpu.CompilerParams(
            dimension_semantics=("parallel",),
            vmem_limit_bytes=vmem_limit,
        ),
        cost_estimate=pl.CostEstimate(
            flops=0,
            transcendentals=0,
            bytes_accessed=2 * rows * lanes * itemsize,
        ),
    )(x2d)

    flat_out = out2d.reshape(-1)
    if pad:
        flat_out = flat_out[:total]
    return flat_out.reshape(orig_shape)


def classifier_forward(x, use_pallas_kernel=False):
    """Classifier.forward: identity.

    Hot path is a zero-cost pass-through (`return x`) — the module has no
    parameters, so touching HBM would only add a full read+write for nothing.
    Set `use_pallas_kernel=True` to route through the Pallas copy kernel
    (debug / pipeline-presence path).
    """
    if not use_pallas_kernel:
        return x
    return _identity_pallas(x)


# TODO(synk): `get_activations` in the reference module has an empty body
# (returns None); there is nothing to translate, so it is intentionally omitted.


if __name__ == "__main__":
    # Donation of an aliased input can emit a harmless "not usable" warning on
    # some backends; keep stdout/stderr clean.
    warnings.filterwarnings("ignore", message=".*donat.*")

    key = jax.random.PRNGKey(0)
    # Small NCHW input consistent with an image classifier's forward signature.
    x = jax.random.normal(key, (2, 4, 16, 16), dtype=jnp.float32)
    x_host = np.asarray(x)  # host reference kept before any donation

    # 1) Hot path: true identity, zero cost.
    y_fast = jax.block_until_ready(classifier_forward(x))
    assert y_fast.shape == x.shape and y_fast.dtype == x.dtype
    assert np.array_equal(np.asarray(y_fast), x_host)

    # 2) Pallas kernel path: donate the input at the jit boundary so
    #    input_output_aliases={0: 0} is genuinely in-place (no defensive copy).
    x_kernel = jnp.asarray(x_host)  # fresh device buffer we are free to donate
    kernel_fn = jax.jit(
        lambda a: classifier_forward(a, use_pallas_kernel=True),
        donate_argnums=0,
    )
    y = jax.block_until_ready(kernel_fn(x_kernel))

    # Correctness check against the reference semantics (identity).
    assert y.shape == x_host.shape
    assert y.dtype == x_host.dtype
    assert np.array_equal(np.asarray(y), x_host)

    print("KERNEL_OK")
</pallas_src>

<mosaic_0001>
module attributes {stable_mosaic.version = 11 : i64} {
  func.func @_identity_copy_kernel(%arg0: i32, %arg1: memref<1x2048xf32, #tpu.memory_space<vmem>>, %arg2: memref<1x2048xf32, #tpu.memory_space<vmem>>) attributes {dimension_semantics = [#tpu.dimension_semantics<parallel>], iteration_bounds = array<i64: 1>, scalar_prefetch = 0 : i64, scratch_operands = 0 : i64, tpu.core_type = #tpu.core_type<tc>, window_params = [{transform_indices = @transform_0, window_bounds = array<i64: 1, 2048>}, {transform_indices = @transform_1, window_bounds = array<i64: 1, 2048>}]} {
    %c0 = arith.constant 0 : index
    %c0_0 = arith.constant 0 : index
    %0 = vector.load %arg1[%c0, %c0_0] : memref<1x2048xf32, #tpu.memory_space<vmem>>, vector<1x2048xf32>
    %c0_1 = arith.constant 0 : index
    %c0_2 = arith.constant 0 : index
    %1 = vector.load %arg2[%c0_1, %c0_2] : memref<1x2048xf32, #tpu.memory_space<vmem>>, vector<1x2048xf32>
    tpu.vector_store %arg2[%c0_1, %c0_2], %0 {strides = array<i32>} : memref<1x2048xf32, #tpu.memory_space<vmem>>, vector<1x2048xf32>,
    return
  }
  func.func @transform_0(%arg0: i32) -> (i32, i32) {
    %c0_i32 = arith.constant 0 : i32
    %c0_i32_0 = arith.constant 0 : i32
    return %arg0, %c0_i32 : i32, i32
  }
  func.func @transform_1(%arg0: i32) -> (i32, i32) {
    %c0_i32 = arith.constant 0 : i32
    %c0_i32_0 = arith.constant 0 : i32
    return %arg0, %c0_i32 : i32, i32
  }
}

</mosaic_0001>

<bundles_post_ra>
// kernel: _lambda_.1
= control target key start
LH: loop header
LB: loop body
LE: loop exit
PB: predicated region body
PF: predicated region fallthrough
CT: control target
= control target key end

     0   :  { %s38_s0 = inlined_call_operand.vmem [shape: f32[1,2048], index: 0, kind: input, shape index: {}, may-alias: {0,1}]   ;;  %s39_s1 = inlined_call_operand.vmem [shape: f32[1,2048], index: 1, kind: output, shape index: {}, may-alias: {0,1}]  }
   0x1   :  { %v8_v0 = vld [vmem:[%s38_s0] sm:$0xff]  ;;  %v9_v1 = vld [vmem:[%s38_s0 + $0x8] sm:$0xff] }
   0x2   :  { %10 = vst [vmem:[%s39_s1] sm:$0xff] %v8_v0  ;;  %11 = vst [vmem:[%s39_s1 + $0x8] sm:$0xff] %v9_v1 }

</bundles_post_ra>
